<compile_context>
chip_gen: v7x
topology: tpu7x:2x2x1
jax: 0.10.0
libtpu: 0.0.40
codegen_flags: <defaults>
</compile_context>

<pallas_src>
import math

import jax
import jax.numpy as jnp
from jax.experimental import pallas as pl
from jax.experimental.pallas import tpu as pltpu


def _make_sh_kernel(num_features: int):
    """Build a kernel that computes/writes only the first `num_features` bands."""

    def kernel(d_ref, o_ref):
        # d_ref: (3, TR, 128)   rows 0..2 = x, y, z
        # o_ref: (num_features, TR, 128)
        x = d_ref[0].astype(jnp.float32)
        y = d_ref[1].astype(jnp.float32)
        z = d_ref[2].astype(jnp.float32)

        # Hoisted shared subexpressions (reused across bands).
        xx = x * x
        yy = y * y
        zz = z * z
        xy = x * y
        yz = y * z
        zx = z * x
        xx_yy = xx - yy
        fzz = 5.0 * zz

        bands = [
            lambda: jnp.full_like(x, 0.28209479177387814),
            lambda: 0.4886025119029199 * y,
            lambda: 0.4886025119029199 * z,
            lambda: 0.4886025119029199 * x,
            lambda: 1.0925484305920792 * xy,
            lambda: 1.0925484305920792 * yz,
            lambda: 0.9461746957575601 * (2.0 * zz - xx - yy),
            lambda: 1.0925484305920792 * zx,
            lambda: 0.5462742152960396 * xx_yy,
            lambda: 0.5900435899266435 * y * (3.0 * xx - yy),
            lambda: 2.890611442640554 * xy * z,
            lambda: 0.4570457994644658 * y * (fzz - 1.0),
            lambda: 0.3731763325901154 * z * (fzz - 3.0),
            lambda: 0.4570457994644658 * x * (fzz - 1.0),
            lambda: 1.445305721320277 * z * xx_yy,
            lambda: 0.5900435899266435 * x * (xx - 3.0 * yy),
        ]
        for k in range(num_features):
            o_ref[k] = bands[k]().astype(o_ref.dtype)

    return kernel


def sh_encoding(directions: jax.Array, degree: int = 4) -> jax.Array:
    """Pallas equivalent of SHEncoding.forward.

    directions: (*batch, 3) float array.
    returns: (*batch, num_features).  Matches the PyTorch module (list slicing
    caps the feature count at the 16 available bands).
    """
    num_features = min((degree + 1) ** 2, 16)

    batch_shape = directions.shape[:-1]
    n = int(math.prod(batch_shape)) if batch_shape else 1
    dtype = directions.dtype

    LANES = 128
    TR_MAX = 256  # 256*128 = 32768 points/step; ~2.4 MiB/step (x2 buffered)
                  # stays well under the v7x 32 MiB default scoped VMEM.

    rows = -(-n // LANES)                       # ceil(n / 128)
    tr = min(TR_MAX, ((rows + 7) // 8) * 8)     # sublane tile, multiple of 8
    rows_pad = -(-rows // tr) * tr
    n_pad = rows_pad * LANES

    # Single pad pass on the small (n, 3) view; transpose+reshape fuse with it.
    d = directions.reshape(n, 3)
    if n_pad != n:
        d = jnp.pad(d, ((0, n_pad - n), (0, 0)))
    d = d.T.reshape(3, rows_pad, LANES)          # (3, rows_pad, 128)

    out = pl.pallas_call(
        _make_sh_kernel(num_features),
        out_shape=jax.ShapeDtypeStruct((num_features, rows_pad, LANES), dtype),
        grid=(rows_pad // tr,),
        in_specs=[pl.BlockSpec((3, tr, LANES), lambda i: (0, i, 0))],
        out_specs=pl.BlockSpec((num_features, tr, LANES), lambda i: (0, i, 0)),
        compiler_params=pltpu.CompilerParams(
            dimension_semantics=("parallel",)
        ),
    )(d)

    # Band-major -> point-major; required by the module's (*batch, features)
    # output contract.  Keep the [:, :n] slice: padded lanes hold garbage bands.
    # TODO(synk): if the consumer can accept band-major (features, N), drop
    # this transpose to cut end-to-end HBM traffic roughly in half.
    out = out.reshape(num_features, n_pad)[:, :n].T
    return out.reshape(*batch_shape, num_features)


def _sh_reference(directions: jax.Array, degree: int = 4) -> jax.Array:
    """Pure-JAX reference mirroring the PyTorch module exactly."""
    x, y, z = directions[..., 0], directions[..., 1], directions[..., 2]
    bands = [
        0.28209479177387814 * jnp.ones_like(x),
        0.4886025119029199 * y,
        0.4886025119029199 * z,
        0.4886025119029199 * x,
        1.0925484305920792 * x * y,
        1.0925484305920792 * y * z,
        0.9461746957575601 * (2 * z * z - x * x - y * y),
        1.0925484305920792 * z * x,
        0.5462742152960396 * (x * x - y * y),
        0.5900435899266435 * y * (3 * x * x - y * y),
        2.890611442640554 * x * y * z,
        0.4570457994644658 * y * (5 * z * z - 1),
        0.3731763325901154 * z * (5 * z * z - 3),
        0.4570457994644658 * x * (5 * z * z - 1),
        1.445305721320277 * z * (x * x - y * y),
        0.5900435899266435 * x * (x * x - 3 * y * y),
    ]
    num_features = min((degree + 1) ** 2, 16)
    return jnp.stack(bands[:num_features], axis=-1)


if __name__ == "__main__":
    key = jax.random.PRNGKey(0)
    # Small batch of direction vectors: (*batch, 3) = (2, 8, 3), normalized.
    raw = jax.random.normal(key, (2, 8, 3), dtype=jnp.float32)
    directions = raw / jnp.linalg.norm(raw, axis=-1, keepdims=True)

    # degree=4 (16 bands, matches the module default).
    out = sh_encoding(directions, degree=4)
    out = jax.block_until_ready(out)
    ref = _sh_reference(directions, degree=4)
    assert out.shape == ref.shape, (out.shape, ref.shape)
    assert jnp.allclose(out, ref, atol=1e-5, rtol=1e-5), "mismatch vs reference (deg=4)"

    # degree=2 (9 bands) exercises the trimmed-output path.
    out2 = jax.block_until_ready(sh_encoding(directions, degree=2))
    ref2 = _sh_reference(directions, degree=2)
    assert out2.shape == ref2.shape, (out2.shape, ref2.shape)
    assert jnp.allclose(out2, ref2, atol=1e-5, rtol=1e-5), "mismatch vs reference (deg=2)"

    print("KERNEL_OK")
</pallas_src>

<mosaic_0001>
module attributes {stable_mosaic.version = 11 : i64} {
  func.func @kernel(%arg0: i32, %arg1: memref<3x8x128xf32, #tpu.memory_space<vmem>>, %arg2: memref<16x8x128xf32, #tpu.memory_space<vmem>>) attributes {dimension_semantics = [#tpu.dimension_semantics<parallel>], iteration_bounds = array<i64: 1>, scalar_prefetch = 0 : i64, scratch_operands = 0 : i64, tpu.core_type = #tpu.core_type<tc>, window_params = [{transform_indices = @transform_0, window_bounds = array<i64: 3, 8, 128>}, {transform_indices = @transform_1, window_bounds = array<i64: 16, 8, 128>}]} {
    %c0 = arith.constant 0 : index
    %c0_0 = arith.constant 0 : index
    %c0_1 = arith.constant 0 : index
    %0 = vector.load %arg1[%c0, %c0_0, %c0_1] : memref<3x8x128xf32, #tpu.memory_space<vmem>>, vector<1x8x128xf32>
    %1 = vector.shape_cast %0 : vector<1x8x128xf32> to vector<8x128xf32>
    %c1 = arith.constant 1 : index
    %c0_2 = arith.constant 0 : index
    %c0_3 = arith.constant 0 : index
    %2 = vector.load %arg1[%c1, %c0_2, %c0_3] : memref<3x8x128xf32, #tpu.memory_space<vmem>>, vector<1x8x128xf32>
    %3 = vector.shape_cast %2 : vector<1x8x128xf32> to vector<8x128xf32>
    %c2 = arith.constant 2 : index
    %c0_4 = arith.constant 0 : index
    %c0_5 = arith.constant 0 : index
    %4 = vector.load %arg1[%c2, %c0_4, %c0_5] : memref<3x8x128xf32, #tpu.memory_space<vmem>>, vector<1x8x128xf32>
    %5 = vector.shape_cast %4 : vector<1x8x128xf32> to vector<8x128xf32>
    %6 = arith.mulf %1, %1 : vector<8x128xf32>
    %7 = arith.mulf %3, %3 : vector<8x128xf32>
    %8 = arith.mulf %5, %5 : vector<8x128xf32>
    %9 = arith.mulf %1, %3 : vector<8x128xf32>
    %10 = arith.mulf %3, %5 : vector<8x128xf32>
    %11 = arith.mulf %5, %1 : vector<8x128xf32>
    %12 = arith.subf %6, %7 : vector<8x128xf32>
    %cst = arith.constant 5.000000e+00 : f32
    %13 = vector.broadcast %cst : f32 to vector<8x128xf32>
    %14 = arith.mulf %13, %8 : vector<8x128xf32>
    %cst_6 = arith.constant 0.282094806 : f32
    %15 = vector.broadcast %cst_6 : f32 to vector<8x128xf32>
    %c0_7 = arith.constant 0 : index
    %c0_8 = arith.constant 0 : index
    %c0_9 = arith.constant 0 : index
    %16 = vector.load %arg2[%c0_7, %c0_8, %c0_9] : memref<16x8x128xf32, #tpu.memory_space<vmem>>, vector<1x8x128xf32>
    %17 = vector.shape_cast %16 : vector<1x8x128xf32> to vector<8x128xf32>
    %18 = vector.shape_cast %15 : vector<8x128xf32> to vector<1x8x128xf32>
    tpu.vector_store %arg2[%c0_7, %c0_8, %c0_9], %18 {strides = array<i32>} : memref<16x8x128xf32, #tpu.memory_space<vmem>>, vector<1x8x128xf32>,
    %cst_10 = arith.constant 0.488602519 : f32
    %19 = vector.broadcast %cst_10 : f32 to vector<8x128xf32>
    %20 = arith.mulf %19, %3 : vector<8x128xf32>
    %c1_11 = arith.constant 1 : index
    %c0_12 = arith.constant 0 : index
    %c0_13 = arith.constant 0 : index
    %21 = vector.load %arg2[%c1_11, %c0_12, %c0_13] : memref<16x8x128xf32, #tpu.memory_space<vmem>>, vector<1x8x128xf32>
    %22 = vector.shape_cast %21 : vector<1x8x128xf32> to vector<8x128xf32>
    %23 = vector.shape_cast %20 : vector<8x128xf32> to vector<1x8x128xf32>
    tpu.vector_store %arg2[%c1_11, %c0_12, %c0_13], %23 {strides = array<i32>} : memref<16x8x128xf32, #tpu.memory_space<vmem>>, vector<1x8x128xf32>,
    %cst_14 = arith.constant 0.488602519 : f32
    %24 = vector.broadcast %cst_14 : f32 to vector<8x128xf32>
    %25 = arith.mulf %24, %5 : vector<8x128xf32>
    %c2_15 = arith.constant 2 : index
    %c0_16 = arith.constant 0 : index
    %c0_17 = arith.constant 0 : index
    %26 = vector.load %arg2[%c2_15, %c0_16, %c0_17] : memref<16x8x128xf32, #tpu.memory_space<vmem>>, vector<1x8x128xf32>
    %27 = vector.shape_cast %26 : vector<1x8x128xf32> to vector<8x128xf32>
    %28 = vector.shape_cast %25 : vector<8x128xf32> to vector<1x8x128xf32>
    tpu.vector_store %arg2[%c2_15, %c0_16, %c0_17], %28 {strides = array<i32>} : memref<16x8x128xf32, #tpu.memory_space<vmem>>, vector<1x8x128xf32>,
    %cst_18 = arith.constant 0.488602519 : f32
    %29 = vector.broadcast %cst_18 : f32 to vector<8x128xf32>
    %30 = arith.mulf %29, %1 : vector<8x128xf32>
    %c3 = arith.constant 3 : index
    %c0_19 = arith.constant 0 : index
    %c0_20 = arith.constant 0 : index
    %31 = vector.load %arg2[%c3, %c0_19, %c0_20] : memref<16x8x128xf32, #tpu.memory_space<vmem>>, vector<1x8x128xf32>
    %32 = vector.shape_cast %31 : vector<1x8x128xf32> to vector<8x128xf32>
    %33 = vector.shape_cast %30 : vector<8x128xf32> to vector<1x8x128xf32>
    tpu.vector_store %arg2[%c3, %c0_19, %c0_20], %33 {strides = array<i32>} : memref<16x8x128xf32, #tpu.memory_space<vmem>>, vector<1x8x128xf32>,
    %cst_21 = arith.constant 1.09254849 : f32
    %34 = vector.broadcast %cst_21 : f32 to vector<8x128xf32>
    %35 = arith.mulf %34, %9 : vector<8x128xf32>
    %c4 = arith.constant 4 : index
    %c0_22 = arith.constant 0 : index
    %c0_23 = arith.constant 0 : index
    %36 = vector.load %arg2[%c4, %c0_22, %c0_23] : memref<16x8x128xf32, #tpu.memory_space<vmem>>, vector<1x8x128xf32>
    %37 = vector.shape_cast %36 : vector<1x8x128xf32> to vector<8x128xf32>
    %38 = vector.shape_cast %35 : vector<8x128xf32> to vector<1x8x128xf32>
    tpu.vector_store %arg2[%c4, %c0_22, %c0_23], %38 {strides = array<i32>} : memref<16x8x128xf32, #tpu.memory_space<vmem>>, vector<1x8x128xf32>,
    %cst_24 = arith.constant 1.09254849 : f32
    %39 = vector.broadcast %cst_24 : f32 to vector<8x128xf32>
    %40 = arith.mulf %39, %10 : vector<8x128xf32>
    %c5 = arith.constant 5 : index
    %c0_25 = arith.constant 0 : index
    %c0_26 = arith.constant 0 : index
    %41 = vector.load %arg2[%c5, %c0_25, %c0_26] : memref<16x8x128xf32, #tpu.memory_space<vmem>>, vector<1x8x128xf32>
    %42 = vector.shape_cast %41 : vector<1x8x128xf32> to vector<8x128xf32>
    %43 = vector.shape_cast %40 : vector<8x128xf32> to vector<1x8x128xf32>
    tpu.vector_store %arg2[%c5, %c0_25, %c0_26], %43 {strides = array<i32>} : memref<16x8x128xf32, #tpu.memory_space<vmem>>, vector<1x8x128xf32>,
    %cst_27 = arith.constant 2.000000e+00 : f32
    %44 = vector.broadcast %cst_27 : f32 to vector<8x128xf32>
    %45 = arith.mulf %44, %8 : vector<8x128xf32>
    %46 = arith.subf %45, %6 : vector<8x128xf32>
    %47 = arith.subf %46, %7 : vector<8x128xf32>
    %cst_28 = arith.constant 0.946174681 : f32
    %48 = vector.broadcast %cst_28 : f32 to vector<8x128xf32>
    %49 = arith.mulf %48, %47 : vector<8x128xf32>
    %c6 = arith.constant 6 : index
    %c0_29 = arith.constant 0 : index
    %c0_30 = arith.constant 0 : index
    %50 = vector.load %arg2[%c6, %c0_29, %c0_30] : memref<16x8x128xf32, #tpu.memory_space<vmem>>, vector<1x8x128xf32>
    %51 = vector.shape_cast %50 : vector<1x8x128xf32> to vector<8x128xf32>
    %52 = vector.shape_cast %49 : vector<8x128xf32> to vector<1x8x128xf32>
    tpu.vector_store %arg2[%c6, %c0_29, %c0_30], %52 {strides = array<i32>} : memref<16x8x128xf32, #tpu.memory_space<vmem>>, vector<1x8x128xf32>,
    %cst_31 = arith.constant 1.09254849 : f32
    %53 = vector.broadcast %cst_31 : f32 to vector<8x128xf32>
    %54 = arith.mulf %53, %11 : vector<8x128xf32>
    %c7 = arith.constant 7 : index
    %c0_32 = arith.constant 0 : index
    %c0_33 = arith.constant 0 : index
    %55 = vector.load %arg2[%c7, %c0_32, %c0_33] : memref<16x8x128xf32, #tpu.memory_space<vmem>>, vector<1x8x128xf32>
    %56 = vector.shape_cast %55 : vector<1x8x128xf32> to vector<8x128xf32>
    %57 = vector.shape_cast %54 : vector<8x128xf32> to vector<1x8x128xf32>
    tpu.vector_store %arg2[%c7, %c0_32, %c0_33], %57 {strides = array<i32>} : memref<16x8x128xf32, #tpu.memory_space<vmem>>, vector<1x8x128xf32>,
    %cst_34 = arith.constant 0.546274245 : f32
    %58 = vector.broadcast %cst_34 : f32 to vector<8x128xf32>
    %59 = arith.mulf %58, %12 : vector<8x128xf32>
    %c8 = arith.constant 8 : index
    %c0_35 = arith.constant 0 : index
    %c0_36 = arith.constant 0 : index
    %60 = vector.load %arg2[%c8, %c0_35, %c0_36] : memref<16x8x128xf32, #tpu.memory_space<vmem>>, vector<1x8x128xf32>
    %61 = vector.shape_cast %60 : vector<1x8x128xf32> to vector<8x128xf32>
    %62 = vector.shape_cast %59 : vector<8x128xf32> to vector<1x8x128xf32>
    tpu.vector_store %arg2[%c8, %c0_35, %c0_36], %62 {strides = array<i32>} : memref<16x8x128xf32, #tpu.memory_space<vmem>>, vector<1x8x128xf32>,
    %cst_37 = arith.constant 0.590043604 : f32
    %63 = vector.broadcast %cst_37 : f32 to vector<8x128xf32>
    %64 = arith.mulf %63, %3 : vector<8x128xf32>
    %cst_38 = arith.constant 3.000000e+00 : f32
    %65 = vector.broadcast %cst_38 : f32 to vector<8x128xf32>
    %66 = arith.mulf %65, %6 : vector<8x128xf32>
    %67 = arith.subf %66, %7 : vector<8x128xf32>
    %68 = arith.mulf %64, %67 : vector<8x128xf32>
    %c9 = arith.constant 9 : index
    %c0_39 = arith.constant 0 : index
    %c0_40 = arith.constant 0 : index
    %69 = vector.load %arg2[%c9, %c0_39, %c0_40] : memref<16x8x128xf32, #tpu.memory_space<vmem>>, vector<1x8x128xf32>
    %70 = vector.shape_cast %69 : vector<1x8x128xf32> to vector<8x128xf32>
    %71 = vector.shape_cast %68 : vector<8x128xf32> to vector<1x8x128xf32>
    tpu.vector_store %arg2[%c9, %c0_39, %c0_40], %71 {strides = array<i32>} : memref<16x8x128xf32, #tpu.memory_space<vmem>>, vector<1x8x128xf32>,
    %cst_41 = arith.constant 2.89061141 : f32
    %72 = vector.broadcast %cst_41 : f32 to vector<8x128xf32>
    %73 = arith.mulf %72, %9 : vector<8x128xf32>
    %74 = arith.mulf %73, %5 : vector<8x128xf32>
    %c10 = arith.constant 10 : index
    %c0_42 = arith.constant 0 : index
    %c0_43 = arith.constant 0 : index
    %75 = vector.load %arg2[%c10, %c0_42, %c0_43] : memref<16x8x128xf32, #tpu.memory_space<vmem>>, vector<1x8x128xf32>
    %76 = vector.shape_cast %75 : vector<1x8x128xf32> to vector<8x128xf32>
    %77 = vector.shape_cast %74 : vector<8x128xf32> to vector<1x8x128xf32>
    tpu.vector_store %arg2[%c10, %c0_42, %c0_43], %77 {strides = array<i32>} : memref<16x8x128xf32, #tpu.memory_space<vmem>>, vector<1x8x128xf32>,
    %cst_44 = arith.constant 0.457045794 : f32
    %78 = vector.broadcast %cst_44 : f32 to vector<8x128xf32>
    %79 = arith.mulf %78, %3 : vector<8x128xf32>
    %cst_45 = arith.constant 1.000000e+00 : f32
    %80 = vector.broadcast %cst_45 : f32 to vector<8x128xf32>
    %81 = arith.subf %14, %80 : vector<8x128xf32>
    %82 = arith.mulf %79, %81 : vector<8x128xf32>
    %c11 = arith.constant 11 : index
    %c0_46 = arith.constant 0 : index
    %c0_47 = arith.constant 0 : index
    %83 = vector.load %arg2[%c11, %c0_46, %c0_47] : memref<16x8x128xf32, #tpu.memory_space<vmem>>, vector<1x8x128xf32>
    %84 = vector.shape_cast %83 : vector<1x8x128xf32> to vector<8x128xf32>
    %85 = vector.shape_cast %82 : vector<8x128xf32> to vector<1x8x128xf32>
    tpu.vector_store %arg2[%c11, %c0_46, %c0_47], %85 {strides = array<i32>} : memref<16x8x128xf32, #tpu.memory_space<vmem>>, vector<1x8x128xf32>,
    %cst_48 = arith.constant 0.373176336 : f32
    %86 = vector.broadcast %cst_48 : f32 to vector<8x128xf32>
    %87 = arith.mulf %86, %5 : vector<8x128xf32>
    %cst_49 = arith.constant 3.000000e+00 : f32
    %88 = vector.broadcast %cst_49 : f32 to vector<8x128xf32>
    %89 = arith.subf %14, %88 : vector<8x128xf32>
    %90 = arith.mulf %87, %89 : vector<8x128xf32>
    %c12 = arith.constant 12 : index
    %c0_50 = arith.constant 0 : index
    %c0_51 = arith.constant 0 : index
    %91 = vector.load %arg2[%c12, %c0_50, %c0_51] : memref<16x8x128xf32, #tpu.memory_space<vmem>>, vector<1x8x128xf32>
    %92 = vector.shape_cast %91 : vector<1x8x128xf32> to vector<8x128xf32>
    %93 = vector.shape_cast %90 : vector<8x128xf32> to vector<1x8x128xf32>
    tpu.vector_store %arg2[%c12, %c0_50, %c0_51], %93 {strides = array<i32>} : memref<16x8x128xf32, #tpu.memory_space<vmem>>, vector<1x8x128xf32>,
    %cst_52 = arith.constant 0.457045794 : f32
    %94 = vector.broadcast %cst_52 : f32 to vector<8x128xf32>
    %95 = arith.mulf %94, %1 : vector<8x128xf32>
    %cst_53 = arith.constant 1.000000e+00 : f32
    %96 = vector.broadcast %cst_53 : f32 to vector<8x128xf32>
    %97 = arith.subf %14, %96 : vector<8x128xf32>
    %98 = arith.mulf %95, %97 : vector<8x128xf32>
    %c13 = arith.constant 13 : index
    %c0_54 = arith.constant 0 : index
    %c0_55 = arith.constant 0 : index
    %99 = vector.load %arg2[%c13, %c0_54, %c0_55] : memref<16x8x128xf32, #tpu.memory_space<vmem>>, vector<1x8x128xf32>
    %100 = vector.shape_cast %99 : vector<1x8x128xf32> to vector<8x128xf32>
    %101 = vector.shape_cast %98 : vector<8x128xf32> to vector<1x8x128xf32>
    tpu.vector_store %arg2[%c13, %c0_54, %c0_55], %101 {strides = array<i32>} : memref<16x8x128xf32, #tpu.memory_space<vmem>>, vector<1x8x128xf32>,
    %cst_56 = arith.constant 1.44530571 : f32
    %102 = vector.broadcast %cst_56 : f32 to vector<8x128xf32>
    %103 = arith.mulf %102, %5 : vector<8x128xf32>
    %104 = arith.mulf %103, %12 : vector<8x128xf32>
    %c14 = arith.constant 14 : index
    %c0_57 = arith.constant 0 : index
    %c0_58 = arith.constant 0 : index
    %105 = vector.load %arg2[%c14, %c0_57, %c0_58] : memref<16x8x128xf32, #tpu.memory_space<vmem>>, vector<1x8x128xf32>
    %106 = vector.shape_cast %105 : vector<1x8x128xf32> to vector<8x128xf32>
    %107 = vector.shape_cast %104 : vector<8x128xf32> to vector<1x8x128xf32>
    tpu.vector_store %arg2[%c14, %c0_57, %c0_58], %107 {strides = array<i32>} : memref<16x8x128xf32, #tpu.memory_space<vmem>>, vector<1x8x128xf32>,
    %cst_59 = arith.constant 0.590043604 : f32
    %108 = vector.broadcast %cst_59 : f32 to vector<8x128xf32>
    %109 = arith.mulf %108, %1 : vector<8x128xf32>
    %cst_60 = arith.constant 3.000000e+00 : f32
    %110 = vector.broadcast %cst_60 : f32 to vector<8x128xf32>
    %111 = arith.mulf %110, %7 : vector<8x128xf32>
    %112 = arith.subf %6, %111 : vector<8x128xf32>
    %113 = arith.mulf %109, %112 : vector<8x128xf32>
    %c15 = arith.constant 15 : index
    %c0_61 = arith.constant 0 : index
    %c0_62 = arith.constant 0 : index
    %114 = vector.load %arg2[%c15, %c0_61, %c0_62] : memref<16x8x128xf32, #tpu.memory_space<vmem>>, vector<1x8x128xf32>
    %115 = vector.shape_cast %114 : vector<1x8x128xf32> to vector<8x128xf32>
    %116 = vector.shape_cast %113 : vector<8x128xf32> to vector<1x8x128xf32>
    tpu.vector_store %arg2[%c15, %c0_61, %c0_62], %116 {strides = array<i32>} : memref<16x8x128xf32, #tpu.memory_space<vmem>>, vector<1x8x128xf32>,
    return
  }
  func.func @transform_0(%arg0: i32) -> (i32, i32, i32) {
    %c0_i32 = arith.constant 0 : i32
    %c0_i32_0 = arith.constant 0 : i32
    %c0_i32_1 = arith.constant 0 : i32
    return %c0_i32, %arg0, %c0_i32_0 : i32, i32, i32
  }
  func.func @transform_1(%arg0: i32) -> (i32, i32, i32) {
    %c0_i32 = arith.constant 0 : i32
    %c0_i32_0 = arith.constant 0 : i32
    %c0_i32_1 = arith.constant 0 : i32
    return %c0_i32, %arg0, %c0_i32_0 : i32, i32, i32
  }
}

</mosaic_0001>

<bundles_post_ra>
// kernel: tpu_custom_call.1
= control target key start
LH: loop header
LB: loop body
LE: loop exit
PB: predicated region body
PF: predicated region fallthrough
CT: control target
= control target key end

     0   :  { %6 = vsyncpa [#allocation3], 0  ;;  %s215_s0 = inlined_call_operand.hbm [shape: f32[3,8,128], index: 0, kind: input, shape index: {}]   ;;  %s216_s1 = inlined_call_operand.hbm [shape: f32[16,8,128], index: 1, kind: output, shape index: {}]  }
   0x1   :  { %7 = vsyncpa [#allocation4], 0  ;;  %s170_s6 = smov [#allocation2]   ;;  %s122_s10 = scalar_lea.hbm %s215_s0, 384 }
   0x2   :  { %s13_s7 = sshll.u32 %s170_s6, 4  ;;  %p123_p0 = scmp.ne.s32.totalorder %s215_s0, %s122_s10  ;;  %s14_s7 = int_to_ptr.vmem [resolvable:$true] %s13_s7 }
   0x3   :  { %p126_p1 = scmp.lt.u32.totalorder %s122_s10, %s215_s0 }
   0x5   :  { %p128_p2 = pnand %p126_p1, %p123_p0 }
   0x7   :  { %131 = shalt.err (!%p128_p2)
}
   0x8   :  { %s132_s15 = scalar_lea.vmem %s14_s7, 384  ;;  %p137_p4 = scmp.lt.s32.totalorder %s14_s7, %s14_s7 }
   0x9   :  { %p133_p3 = scmp.ne.s32.totalorder %s14_s7, %s132_s15  ;;  %p138_p5 = scmp.lt.s32.totalorder %s132_s15, %s132_s15 }
   0xb   :  { %p139_p6 = por %p138_p5, %p137_p4 }
   0xd   :  { %p140_p7 = pnand %p139_p6, %p133_p3 }
   0xf   :  { %143 = shalt.err (!%p140_p7)
}
  0x10   :  { %s171_s16 = smov 128   ;;  %s172_s17 = smov 8  }
  0x11   :  { %19 = dma.hbm_to_vmem [thread:$0]  %s215_s0, 384, %s14_s7, [#allocation3], %s171_s16, %s171_s16, %s172_s17  }
  0x12   :  { %166 = dma.done.wait [#allocation3], 384  }
  0x13   :  { %167 = vsyncadd [#allocation3], 4294966912  ;;  %v173_v0 = vmov 0.2820948   ;;  %v25_v1 = vld [vmem:[#allocation2 + $0x8] sm:$0xff]  ;;  %v27_v2 = vld [vmem:[#allocation2 + $0x10] sm:$0xff] }
  0x14   :  { %36 = vst [vmem:[#allocation5] sm:$0xff] %v173_v0  ;;  %v23_v3 = vld [vmem:[#allocation2] sm:$0xff]  ;;  %v37_v4 = vmul.f32 0.48860252, %v25_v1  ;;  %v40_v5 = vmul.f32 0.48860252, %v27_v2  ;;  %v32_v8 = vmul.f32 %v27_v2, %v25_v1  ;;  %v29_v10 = vmul.f32 %v25_v1, %v25_v1 }
  0x15   :  { %v43_v6 = vmul.f32 0.48860252, %v23_v3  ;;  %v31_v7 = vmul.f32 %v25_v1, %v23_v3  ;;  %v28_v9 = vmul.f32 %v23_v3, %v23_v3  ;;  %v30_v11 = vmul.f32 %v27_v2, %v27_v2  ;;  %s174_s0 = smov [#allocation5]  }
  0x16   :  { %39 = vst [vmem:[#allocation5 + $0x8] sm:$0xff] %v37_v4  ;;  %42 = vst [vmem:[#allocation5 + $0x10] sm:$0xff] %v40_v5  ;;  %v33_v13 = vmul.f32 %v27_v2, %v23_v3  ;;  %v64_v14 = vmul.f32 0.5900436, %v25_v1  ;;  %v49_v16 = vmul.f32 1.0925485, %v32_v8 }
  0x17   :  { %45 = vst [vmem:[#allocation5 + $0x18] sm:$0xff] %v43_v6  ;;  %v46_v12 = vmul.f32 1.0925485, %v31_v7  ;;  %v70_v15 = vmul.f32 2.8906114, %v31_v7  ;;  %v52_v17 = vmul.f32 2.0, %v30_v11  ;;  %v34_v18 = vsub.f32 %v28_v9, %v29_v10 }
  0x18   :  { %v65_v19 = vmul.f32 3.0, %v28_v9  ;;  %v58_v20 = vmul.f32 1.0925485, %v33_v13  ;;  %v35_v22 = vmul.f32 5.0, %v30_v11  ;;  %v74_v23 = vmul.f32 0.4570458, %v25_v1 }
  0x19   :  { %48 = vst [vmem:[#allocation5 + $0x20] sm:$0xff] %v46_v12  ;;  %v71_v21 = vmul.f32 %v70_v15, %v27_v2  ;;  %51 = vst [vmem:[#allocation5 + $0x28] sm:$0xff] %v49_v16  ;;  %v53_v24 = vsub.f32 %v52_v17, %v28_v9  ;;  %v61_v25 = vmul.f32 0.54627424, %v34_v18  ;;  %v79_v27 = vmul.f32 0.37317634, %v27_v2 }
  0x1a   :  { %v66_v26 = vsub.f32 %v65_v19, %v29_v10  ;;  %60 = vst [vmem:[#allocation5 + $0x38] sm:$0xff] %v58_v20  ;;  %v115_v28 = vadd.f32 -1.0, %v35_v22  ;;  %v116_v29 = vadd.f32 -3.0, %v35_v22  ;;  %v84_v30 = vmul.f32 0.4570458, %v23_v3  ;;  %s103_s20 = sshll.u32 %s174_s0, 4  ;;  %s104_s20 = int_to_ptr.vmem [resolvable:$true] %s103_s20 }
  0x1b   :  { %73 = vst [vmem:[#allocation5 + $0x50] sm:$0xff] %v71_v21  ;;  %v88_v31 = vmul.f32 1.4453057, %v27_v2  ;;  %v54_v32 = vsub.f32 %v53_v24, %v29_v10  ;;  %63 = vst [vmem:[#allocation5 + $0x40] sm:$0xff] %v61_v25  ;;  %v92_v34 = vmul.f32 0.5900436, %v23_v3  ;;  %p149_p9 = scmp.lt.s32.totalorder %s104_s20, %s104_s20 }
  0x1c   :  { %v67_v33 = vmul.f32 %v66_v26, %v64_v14  ;;  %v93_v35 = vmul.f32 3.0, %v29_v10  ;;  %v76_v36 = vmul.f32 %v115_v28, %v74_v23  ;;  %v81_v37 = vmul.f32 %v116_v29, %v79_v27  ;;  %s144_s21 = scalar_lea.vmem %s104_s20, 2048 }
  0x1d   :  { %v85_v38 = vmul.f32 %v115_v28, %v84_v30  ;;  %v89_v39 = vmul.f32 %v88_v31, %v34_v18  ;;  %v55_v40 = vmul.f32 0.9461747, %v54_v32  ;;  %p145_p8 = scmp.ne.s32.totalorder %s104_s20, %s144_s21  ;;  %p150_p10 = scmp.lt.s32.totalorder %s144_s21, %s144_s21 }
  0x1e   :  { %69 = vst [vmem:[#allocation5 + $0x48] sm:$0xff] %v67_v33  ;;  %v94_v41 = vsub.f32 %v28_v9, %v93_v35  ;;  %78 = vst [vmem:[#allocation5 + $0x58] sm:$0xff] %v76_v36 }
  0x1f   :  { %83 = vst [vmem:[#allocation5 + $0x60] sm:$0xff] %v81_v37  ;;  %87 = vst [vmem:[#allocation5 + $0x68] sm:$0xff] %v85_v38  ;;  %p151_p11 = por %p150_p10, %p149_p9 }
  0x20   :  { %91 = vst [vmem:[#allocation5 + $0x70] sm:$0xff] %v89_v39  ;;  %57 = vst [vmem:[#allocation5 + $0x30] sm:$0xff] %v55_v40  ;;  %v95_v42 = vmul.f32 %v94_v41, %v92_v34 }
  0x21   :  { %p152_p12 = pnand %p151_p11, %p145_p8 }
  0x22   :  { %97 = vst [vmem:[#allocation5 + $0x78] sm:$0xff] %v95_v42 }
  0x23   :  { %155 = shalt.err (!%p152_p12)
}
  0x24   :  { %s156_s24 = scalar_lea.hbm %s216_s1, 2048 }
  0x25   :  { %p157_p13 = scmp.ne.s32.totalorder %s216_s1, %s156_s24  ;;  %p160_p0 = scmp.lt.u32.totalorder %s156_s24, %s216_s1 }
  0x27   :  { %p162_p1 = pnand %p160_p0, %p157_p13 }
  0x29   :  { %165 = shalt.err (!%p162_p1)
}
  0x2a   :  { %109 = dma.vmem_to_hbm [thread:$0]  %s104_s20, 2048, %s216_s1, [#allocation4], %s171_s16, %s171_s16, %s172_s17  }
  0x2b   :  { %168 = dma.done.wait [#allocation4], 2048  }
  0x2c   :  { %169 = vsyncadd [#allocation4], 4294965248 }
  0x2d   :  { %113 = vsyncpa [#allocation3], 1 }
  0x2e   :  { %114 = vsyncpa [#allocation4], 1 }

</bundles_post_ra>
